<compile_context>
chip_gen: v7x
topology: tpu7x:2x2x1
jax: 0.10.0
libtpu: 0.0.40
codegen_flags: <defaults>
</compile_context>

<pallas_src>
from types import SimpleNamespace

import jax
import jax.numpy as jnp
from jax import lax
from jax.experimental import pallas as pl
from jax.experimental.pallas import tpu as pltpu

EPS = 1e-12        # F.normalize default eps
EMB = 100          # Contrastive_model(hidden_channels, 100) embedding width
EMB_PAD = 128      # lane-padded embedding width
D_VIDEO = 400
D_AUDIO = 768


def _round8(n):
    return -(-n // 8) * 8


def make_layout(hidden_channels, out_channels):
    """Row offsets of every parameter inside the two packed buffers.

    narrow buffer : lane width = H   (all weights with out_features == H, plus
                                      the width-H biases)
    wide buffer   : lane width = 128 (wv3 / wa3 / wc2 and their biases, columns
                                      zero-padded to 128)
    All section offsets are multiples of 8 rows so every in-kernel ref slice is
    sublane-tile aligned.
    """
    assert hidden_channels <= 128 and out_channels <= 128
    H8 = _round8(hidden_channels)
    # --- narrow buffer (lane width = H) ---
    wv1 = 0
    wa1 = wv1 + D_VIDEO
    wv2 = wa1 + D_AUDIO
    wa2 = wv2 + H8
    wc1a = wa2 + H8            # classifier layer-1, audio half of cat (K padded to 128)
    wc1v = wc1a + EMB_PAD      # classifier layer-1, video half of cat
    bn = wc1v + EMB_PAD        # rows: bv1 bv2 ba1 ba2 bc1 (+3 zero pad)
    n_rows = bn + 8
    # --- wide buffer (lane width = 128) ---
    wv3 = 0
    wa3 = wv3 + H8
    wc2 = wa3 + H8
    bw = wc2 + H8              # rows: bv3 ba3 bc2 (+5 zero pad)
    w_rows = bw + 8
    return SimpleNamespace(**locals())


def _make_kernel(L, H, out_channels):
    def kernel(xv_ref, xa_ref, wn_ref, ww_ref, out_ref):
        f32 = jnp.float32

        def mm(x, w):
            # Cast the activation to the (possibly bf16) weight dtype for a
            # single-pass MXU matmul; always accumulate in f32.
            return jnp.dot(x.astype(w.dtype), w, preferred_element_type=f32)

        xv = xv_ref[...]                                   # (B, 400)
        xa = xa_ref[...]                                   # (B, 768)

        bn = wn_ref[L.bn:L.bn + 8, :].astype(f32)          # (8, H)   one aligned load
        bw = ww_ref[L.bw:L.bw + 8, :].astype(f32)          # (8, 128) one aligned load
        bv1, bv2, ba1, ba2, bc1 = bn[0:1], bn[1:2], bn[2:3], bn[3:4], bn[4:5]
        bv3, ba3, bc2 = bw[0:1], bw[1:2], bw[2:3]

        # --- video embedding MLP: 400 -> H -> H -> 100 (out lanes padded to 128) ---
        v = jnp.maximum(mm(xv, wn_ref[L.wv1:L.wv1 + D_VIDEO, :]) + bv1, 0.0)
        v = jnp.maximum(mm(v, wn_ref[L.wv2:L.wv2 + H, :]) + bv2, 0.0)
        v = mm(v, ww_ref[L.wv3:L.wv3 + H, :]) + bv3        # (B, 128); lanes >= 100 are 0

        # --- audio embedding MLP: 768 -> H -> H -> 100 ---
        a = jnp.maximum(mm(xa, wn_ref[L.wa1:L.wa1 + D_AUDIO, :]) + ba1, 0.0)
        a = jnp.maximum(mm(a, wn_ref[L.wa2:L.wa2 + H, :]) + ba2, 0.0)
        a = mm(a, ww_ref[L.wa3:L.wa3 + H, :]) + ba3

        # --- row-wise L2 normalize (padded lanes are exact zeros) ---
        # v / max(||v||, eps) == v * rsqrt(max(sum(v*v), eps^2))   (EUP rsqrt)
        v = v * lax.rsqrt(jnp.maximum(jnp.sum(v * v, axis=-1, keepdims=True), EPS * EPS))
        a = a * lax.rsqrt(jnp.maximum(jnp.sum(a * a, axis=-1, keepdims=True), EPS * EPS))

        # --- classifier on cat((audio, video), dim=1), without materializing cat:
        #     h = a @ Wc1[:100] + v @ Wc1[100:200] + bc1 ---
        h = (mm(a, wn_ref[L.wc1a:L.wc1a + EMB_PAD, :]) +
             mm(v, wn_ref[L.wc1v:L.wc1v + EMB_PAD, :]) + bc1)
        h = jnp.maximum(h, 0.0)
        logits = mm(h, ww_ref[L.wc2:L.wc2 + H, :]) + bc2   # (B, 128)
        out_ref[...] = logits[:, :out_channels].astype(out_ref.dtype)

    return kernel


def downstream_forward(x_video, x_audio, w_narrow, w_wide, hidden_channels,
                       out_channels):
    """x_video: (B, 400), x_audio: (B, 768) -> (B, out_channels)."""
    B = x_video.shape[0]
    L = make_layout(hidden_channels, out_channels)
    # No grid: all operands (~260 KB) are single full blocks resident in VMEM.
    return pl.pallas_call(
        _make_kernel(L, hidden_channels, out_channels),
        out_shape=jax.ShapeDtypeStruct((B, out_channels), jnp.float32),
        in_specs=[pl.BlockSpec(memory_space=pltpu.MemorySpace.VMEM)] * 4,
        out_specs=pl.BlockSpec(memory_space=pltpu.MemorySpace.VMEM),
    )(x_video, x_audio, w_narrow, w_wide)


def init_params(key, hidden_channels, out_channels):
    """Deterministic synthetic parameters. Linear weights stored transposed,
    i.e. shape (in_features, out_features); biases as (1, out_features)."""
    def linear(key, fan_in, fan_out):
        kw, kb = jax.random.split(key)
        bound = 1.0 / jnp.sqrt(fan_in)
        w = jax.random.uniform(kw, (fan_in, fan_out), jnp.float32, -bound, bound)
        b = jax.random.uniform(kb, (1, fan_out), jnp.float32, -bound, bound)
        return w, b

    keys = jax.random.split(key, 8)
    H = hidden_channels
    p = {}
    # embedding_video: 400 -> H -> H -> 100
    p["wv1"], p["bv1"] = linear(keys[0], D_VIDEO, H)
    p["wv2"], p["bv2"] = linear(keys[1], H, H)
    p["wv3"], p["bv3"] = linear(keys[2], H, EMB)
    # embedding_audio: 768 -> H -> H -> 100
    p["wa1"], p["ba1"] = linear(keys[3], D_AUDIO, H)
    p["wa2"], p["ba2"] = linear(keys[4], H, H)
    p["wa3"], p["ba3"] = linear(keys[5], H, EMB)
    # classifier: 200 -> H -> out_channels
    p["wc1"], p["bc1"] = linear(keys[6], 2 * EMB, H)
    p["wc2"], p["bc2"] = linear(keys[7], H, out_channels)
    return p


def pack_params(p, hidden_channels, out_channels, dtype=jnp.float32):
    """Pack all 17 weights/biases into two tight buffers matching make_layout.
    Zero padding is numerically inert (ReLU(0)=0, zero lanes don't change the
    L2 norm). dtype=jnp.bfloat16 halves the weight DMA on v6e/v7x."""
    H = hidden_channels
    L = make_layout(H, out_channels)

    wn = jnp.zeros((L.n_rows, H), jnp.float32)
    wn = wn.at[L.wv1:L.wv1 + D_VIDEO, :].set(p["wv1"])
    wn = wn.at[L.wa1:L.wa1 + D_AUDIO, :].set(p["wa1"])
    wn = wn.at[L.wv2:L.wv2 + H, :].set(p["wv2"])
    wn = wn.at[L.wa2:L.wa2 + H, :].set(p["wa2"])
    wn = wn.at[L.wc1a:L.wc1a + EMB, :].set(p["wc1"][:EMB])      # audio half of cat
    wn = wn.at[L.wc1v:L.wc1v + EMB, :].set(p["wc1"][EMB:])      # video half of cat
    wn = wn.at[L.bn + 0, :].set(p["bv1"][0])
    wn = wn.at[L.bn + 1, :].set(p["bv2"][0])
    wn = wn.at[L.bn + 2, :].set(p["ba1"][0])
    wn = wn.at[L.bn + 3, :].set(p["ba2"][0])
    wn = wn.at[L.bn + 4, :].set(p["bc1"][0])

    ww = jnp.zeros((L.w_rows, EMB_PAD), jnp.float32)
    ww = ww.at[L.wv3:L.wv3 + H, :EMB].set(p["wv3"])
    ww = ww.at[L.wa3:L.wa3 + H, :EMB].set(p["wa3"])
    ww = ww.at[L.wc2:L.wc2 + H, :out_channels].set(p["wc2"])
    ww = ww.at[L.bw + 0, :EMB].set(p["bv3"][0])
    ww = ww.at[L.bw + 1, :EMB].set(p["ba3"][0])
    ww = ww.at[L.bw + 2, :out_channels].set(p["bc2"][0])

    return wn.astype(dtype), ww.astype(dtype)


def reference_forward(x_video, x_audio, p):
    """Pure-JAX reference mirroring the PyTorch module exactly."""
    def mlp(x, w1, b1, w2, b2, w3, b3):
        x = jnp.maximum(x @ w1 + b1, 0.0)
        x = jnp.maximum(x @ w2 + b2, 0.0)
        return x @ w3 + b3

    v = mlp(x_video, p["wv1"], p["bv1"], p["wv2"], p["bv2"], p["wv3"], p["bv3"])
    a = mlp(x_audio, p["wa1"], p["ba1"], p["wa2"], p["ba2"], p["wa3"], p["ba3"])
    v = v / jnp.maximum(jnp.linalg.norm(v, axis=1, keepdims=True), EPS)
    a = a / jnp.maximum(jnp.linalg.norm(a, axis=1, keepdims=True), EPS)
    cat = jnp.concatenate([a, v], axis=1)
    h = jnp.maximum(cat @ p["wc1"] + p["bc1"], 0.0)
    return h @ p["wc2"] + p["bc2"]


if __name__ == "__main__":
    BATCH = 4
    HIDDEN = 32        # hidden_channels
    OUT_CH = 10        # classifier out_channels

    key = jax.random.PRNGKey(0)
    k_xv, k_xa, k_p = jax.random.split(key, 3)
    x_video = jax.random.normal(k_xv, (BATCH, D_VIDEO), jnp.float32)
    x_audio = jax.random.normal(k_xa, (BATCH, D_AUDIO), jnp.float32)
    params = init_params(k_p, HIDDEN, OUT_CH)
    # f32 packing for exact parity with the f32 reference; pass
    # dtype=jnp.bfloat16 on v6e/v7x to halve the weight DMA.
    w_narrow, w_wide = jax.block_until_ready(
        pack_params(params, HIDDEN, OUT_CH, dtype=jnp.float32))

    out = downstream_forward(x_video, x_audio, w_narrow, w_wide, HIDDEN, OUT_CH)
    out = jax.block_until_ready(out)

    ref = reference_forward(x_video, x_audio, params)
    assert out.shape == (BATCH, OUT_CH)
    assert jnp.allclose(out, ref, atol=1e-3, rtol=1e-3), "mismatch vs reference"

    print("KERNEL_OK")
</pallas_src>

<mosaic_0001>
module attributes {stable_mosaic.version = 11 : i64} {
  func.func @kernel(%arg0: memref<4x400xf32, #tpu.memory_space<vmem>>, %arg1: memref<4x768xf32, #tpu.memory_space<vmem>>, %arg2: memref<1496x32xf32, #tpu.memory_space<vmem>>, %arg3: memref<104x128xf32, #tpu.memory_space<vmem>>, %arg4: memref<4x10xf32, #tpu.memory_space<vmem>>) attributes {dimension_semantics = [], scalar_prefetch = 0 : i64, scratch_operands = 0 : i64, tpu.core_type = #tpu.core_type<tc>} {
    %c0 = arith.constant 0 : index
    %c0_0 = arith.constant 0 : index
    %0 = vector.load %arg0[%c0, %c0_0] : memref<4x400xf32, #tpu.memory_space<vmem>>, vector<4x400xf32>
    %c0_1 = arith.constant 0 : index
    %c0_2 = arith.constant 0 : index
    %1 = vector.load %arg1[%c0_1, %c0_2] : memref<4x768xf32, #tpu.memory_space<vmem>>, vector<4x768xf32>
    %c1488 = arith.constant 1488 : index
    %c0_3 = arith.constant 0 : index
    %2 = vector.load %arg2[%c1488, %c0_3] : memref<1496x32xf32, #tpu.memory_space<vmem>>, vector<8x32xf32>
    %c96 = arith.constant 96 : index
    %c0_4 = arith.constant 0 : index
    %3 = vector.load %arg3[%c96, %c0_4] : memref<104x128xf32, #tpu.memory_space<vmem>>, vector<8x128xf32>
    %4 = vector.extract_strided_slice %2 {offsets = [0, 0], sizes = [1, 32], strides = [1, 1]} : vector<8x32xf32> to vector<1x32xf32>
    %5 = vector.extract_strided_slice %2 {offsets = [1, 0], sizes = [1, 32], strides = [1, 1]} : vector<8x32xf32> to vector<1x32xf32>
    %6 = vector.extract_strided_slice %2 {offsets = [2, 0], sizes = [1, 32], strides = [1, 1]} : vector<8x32xf32> to vector<1x32xf32>
    %7 = vector.extract_strided_slice %2 {offsets = [3, 0], sizes = [1, 32], strides = [1, 1]} : vector<8x32xf32> to vector<1x32xf32>
    %8 = vector.extract_strided_slice %2 {offsets = [4, 0], sizes = [1, 32], strides = [1, 1]} : vector<8x32xf32> to vector<1x32xf32>
    %9 = vector.extract_strided_slice %3 {offsets = [0, 0], sizes = [1, 128], strides = [1, 1]} : vector<8x128xf32> to vector<1x128xf32>
    %10 = vector.extract_strided_slice %3 {offsets = [1, 0], sizes = [1, 128], strides = [1, 1]} : vector<8x128xf32> to vector<1x128xf32>
    %11 = vector.extract_strided_slice %3 {offsets = [2, 0], sizes = [1, 128], strides = [1, 1]} : vector<8x128xf32> to vector<1x128xf32>
    %c0_5 = arith.constant 0 : index
    %c0_6 = arith.constant 0 : index
    %12 = vector.load %arg2[%c0_5, %c0_6] : memref<1496x32xf32, #tpu.memory_space<vmem>>, vector<400x32xf32>
    %cst = arith.constant dense<0.000000e+00> : vector<4x32xf32>
    %13 = tpu.matmul %0, %12, %cst {dimension_numbers = #tpu.dot_dimension_numbers<[1], [0], [0], [1], [0, 0, 1, 1], [], []>} : vector<4x400xf32>, vector<400x32xf32>, vector<4x32xf32> -> vector<4x32xf32>
    %14 = vector.broadcast %4 : vector<1x32xf32> to vector<4x32xf32>
    %15 = arith.addf %13, %14 : vector<4x32xf32>
    %cst_7 = arith.constant 0.000000e+00 : f32
    %16 = vector.broadcast %cst_7 : f32 to vector<4x32xf32>
    %17 = arith.maximumf %15, %16 : vector<4x32xf32>
    %c1168 = arith.constant 1168 : index
    %c0_8 = arith.constant 0 : index
    %18 = vector.load %arg2[%c1168, %c0_8] : memref<1496x32xf32, #tpu.memory_space<vmem>>, vector<32x32xf32>
    %cst_9 = arith.constant dense<0.000000e+00> : vector<4x32xf32>
    %19 = tpu.matmul %17, %18, %cst_9 {dimension_numbers = #tpu.dot_dimension_numbers<[1], [0], [0], [1], [0, 0, 1, 1], [], []>} : vector<4x32xf32>, vector<32x32xf32>, vector<4x32xf32> -> vector<4x32xf32>
    %20 = vector.broadcast %5 : vector<1x32xf32> to vector<4x32xf32>
    %21 = arith.addf %19, %20 : vector<4x32xf32>
    %cst_10 = arith.constant 0.000000e+00 : f32
    %22 = vector.broadcast %cst_10 : f32 to vector<4x32xf32>
    %23 = arith.maximumf %21, %22 : vector<4x32xf32>
    %c0_11 = arith.constant 0 : index
    %c0_12 = arith.constant 0 : index
    %24 = vector.load %arg3[%c0_11, %c0_12] : memref<104x128xf32, #tpu.memory_space<vmem>>, vector<32x128xf32>
    %cst_13 = arith.constant dense<0.000000e+00> : vector<4x128xf32>
    %25 = tpu.matmul %23, %24, %cst_13 {dimension_numbers = #tpu.dot_dimension_numbers<[1], [0], [0], [1], [0, 0, 1, 1], [], []>} : vector<4x32xf32>, vector<32x128xf32>, vector<4x128xf32> -> vector<4x128xf32>
    %26 = vector.broadcast %9 : vector<1x128xf32> to vector<4x128xf32>
    %27 = arith.addf %25, %26 : vector<4x128xf32>
    %c400 = arith.constant 400 : index
    %c0_14 = arith.constant 0 : index
    %28 = vector.load %arg2[%c400, %c0_14] : memref<1496x32xf32, #tpu.memory_space<vmem>>, vector<768x32xf32>
    %cst_15 = arith.constant dense<0.000000e+00> : vector<4x32xf32>
    %29 = tpu.matmul %1, %28, %cst_15 {dimension_numbers = #tpu.dot_dimension_numbers<[1], [0], [0], [1], [0, 0, 1, 1], [], []>} : vector<4x768xf32>, vector<768x32xf32>, vector<4x32xf32> -> vector<4x32xf32>
    %30 = vector.broadcast %6 : vector<1x32xf32> to vector<4x32xf32>
    %31 = arith.addf %29, %30 : vector<4x32xf32>
    %cst_16 = arith.constant 0.000000e+00 : f32
    %32 = vector.broadcast %cst_16 : f32 to vector<4x32xf32>
    %33 = arith.maximumf %31, %32 : vector<4x32xf32>
    %c1200 = arith.constant 1200 : index
    %c0_17 = arith.constant 0 : index
    %34 = vector.load %arg2[%c1200, %c0_17] : memref<1496x32xf32, #tpu.memory_space<vmem>>, vector<32x32xf32>
    %cst_18 = arith.constant dense<0.000000e+00> : vector<4x32xf32>
    %35 = tpu.matmul %33, %34, %cst_18 {dimension_numbers = #tpu.dot_dimension_numbers<[1], [0], [0], [1], [0, 0, 1, 1], [], []>} : vector<4x32xf32>, vector<32x32xf32>, vector<4x32xf32> -> vector<4x32xf32>
    %36 = vector.broadcast %7 : vector<1x32xf32> to vector<4x32xf32>
    %37 = arith.addf %35, %36 : vector<4x32xf32>
    %cst_19 = arith.constant 0.000000e+00 : f32
    %38 = vector.broadcast %cst_19 : f32 to vector<4x32xf32>
    %39 = arith.maximumf %37, %38 : vector<4x32xf32>
    %c32 = arith.constant 32 : index
    %c0_20 = arith.constant 0 : index
    %40 = vector.load %arg3[%c32, %c0_20] : memref<104x128xf32, #tpu.memory_space<vmem>>, vector<32x128xf32>
    %cst_21 = arith.constant dense<0.000000e+00> : vector<4x128xf32>
    %41 = tpu.matmul %39, %40, %cst_21 {dimension_numbers = #tpu.dot_dimension_numbers<[1], [0], [0], [1], [0, 0, 1, 1], [], []>} : vector<4x32xf32>, vector<32x128xf32>, vector<4x128xf32> -> vector<4x128xf32>
    %42 = vector.broadcast %10 : vector<1x128xf32> to vector<4x128xf32>
    %43 = arith.addf %41, %42 : vector<4x128xf32>
    %44 = arith.mulf %27, %27 : vector<4x128xf32>
    %cst_22 = arith.constant dense<0.000000e+00> : vector<4xf32>
    %45 = vector.multi_reduction <add>, %44, %cst_22 [1] : vector<4x128xf32> to vector<4xf32>
    %46 = vector.shape_cast %45 : vector<4xf32> to vector<4x1xf32>
    %cst_23 = arith.constant 1.000000e-24 : f32
    %47 = vector.broadcast %cst_23 : f32 to vector<4x1xf32>
    %48 = arith.maximumf %46, %47 : vector<4x1xf32>
    %49 = math.rsqrt %48 : vector<4x1xf32>
    %50 = vector.broadcast %49 : vector<4x1xf32> to vector<4x128xf32>
    %51 = arith.mulf %27, %50 : vector<4x128xf32>
    %52 = arith.mulf %43, %43 : vector<4x128xf32>
    %cst_24 = arith.constant dense<0.000000e+00> : vector<4xf32>
    %53 = vector.multi_reduction <add>, %52, %cst_24 [1] : vector<4x128xf32> to vector<4xf32>
    %54 = vector.shape_cast %53 : vector<4xf32> to vector<4x1xf32>
    %cst_25 = arith.constant 1.000000e-24 : f32
    %55 = vector.broadcast %cst_25 : f32 to vector<4x1xf32>
    %56 = arith.maximumf %54, %55 : vector<4x1xf32>
    %57 = math.rsqrt %56 : vector<4x1xf32>
    %58 = vector.broadcast %57 : vector<4x1xf32> to vector<4x128xf32>
    %59 = arith.mulf %43, %58 : vector<4x128xf32>
    %c1232 = arith.constant 1232 : index
    %c0_26 = arith.constant 0 : index
    %60 = vector.load %arg2[%c1232, %c0_26] : memref<1496x32xf32, #tpu.memory_space<vmem>>, vector<128x32xf32>
    %cst_27 = arith.constant dense<0.000000e+00> : vector<4x32xf32>
    %61 = tpu.matmul %59, %60, %cst_27 {dimension_numbers = #tpu.dot_dimension_numbers<[1], [0], [0], [1], [0, 0, 1, 1], [], []>} : vector<4x128xf32>, vector<128x32xf32>, vector<4x32xf32> -> vector<4x32xf32>
    %c1360 = arith.constant 1360 : index
    %c0_28 = arith.constant 0 : index
    %62 = vector.load %arg2[%c1360, %c0_28] : memref<1496x32xf32, #tpu.memory_space<vmem>>, vector<128x32xf32>
    %cst_29 = arith.constant dense<0.000000e+00> : vector<4x32xf32>
    %63 = tpu.matmul %51, %62, %cst_29 {dimension_numbers = #tpu.dot_dimension_numbers<[1], [0], [0], [1], [0, 0, 1, 1], [], []>} : vector<4x128xf32>, vector<128x32xf32>, vector<4x32xf32> -> vector<4x32xf32>
    %64 = arith.addf %61, %63 : vector<4x32xf32>
    %65 = vector.broadcast %8 : vector<1x32xf32> to vector<4x32xf32>
    %66 = arith.addf %64, %65 : vector<4x32xf32>
    %cst_30 = arith.constant 0.000000e+00 : f32
    %67 = vector.broadcast %cst_30 : f32 to vector<4x32xf32>
    %68 = arith.maximumf %66, %67 : vector<4x32xf32>
    %c64 = arith.constant 64 : index
    %c0_31 = arith.constant 0 : index
    %69 = vector.load %arg3[%c64, %c0_31] : memref<104x128xf32, #tpu.memory_space<vmem>>, vector<32x128xf32>
    %cst_32 = arith.constant dense<0.000000e+00> : vector<4x128xf32>
    %70 = tpu.matmul %68, %69, %cst_32 {dimension_numbers = #tpu.dot_dimension_numbers<[1], [0], [0], [1], [0, 0, 1, 1], [], []>} : vector<4x32xf32>, vector<32x128xf32>, vector<4x128xf32> -> vector<4x128xf32>
    %71 = vector.broadcast %11 : vector<1x128xf32> to vector<4x128xf32>
    %72 = arith.addf %70, %71 : vector<4x128xf32>
    %73 = vector.extract_strided_slice %72 {offsets = [0, 0], sizes = [4, 10], strides = [1, 1]} : vector<4x128xf32> to vector<4x10xf32>
    %c0_33 = arith.constant 0 : index
    %c0_34 = arith.constant 0 : index
    %74 = vector.load %arg4[%c0_33, %c0_34] : memref<4x10xf32, #tpu.memory_space<vmem>>, vector<4x10xf32>
    tpu.vector_store %arg4[%c0_33, %c0_34], %73 {strides = array<i32>} : memref<4x10xf32, #tpu.memory_space<vmem>>, vector<4x10xf32>,
    return
  }
}

</mosaic_0001>

<bundles_post_ra>
// kernel: tpu_custom_call.1
= control target key start
LH: loop header
LB: loop body
LE: loop exit
PB: predicated region body
PF: predicated region fallthrough
CT: control target
= control target key end

     0   :  { %v1765_v4 = vmov 0.0|0.0   ;;  %s2518_s0 = inlined_call_operand.vmem [shape: f32[4,400], index: 0, kind: input, shape index: {}]   ;;  %s2519_s1 = inlined_call_operand.vmem [shape: f32[4,768], index: 1, kind: input, shape index: {}]   ;;  %s2520_s2 = inlined_call_operand.vmem [shape: f32[1496,32], index: 2, kind: input, shape index: {}]   ;;  %s2521_s3 = inlined_call_operand.vmem [shape: f32[104,128], index: 3, kind: input, shape index: {}]   ;;  %s2522_s4 = inlined_call_operand.hbm [shape: f32[4,10], index: 4, kind: output, shape index: {}]  }
   0x1   :  { %v41_v0 = vld [vmem:[%s2520_s2 + $0x80] sm:$0xff]  ;;  %v42_v1 = vld [vmem:[%s2520_s2 + $0x88] sm:$0xff]  ;;  %1527 = vmatprep.subr.bf16.mxu1 %v1765_v4  ;;  %v43_v10 = vld [vmem:[%s2520_s2 + $0x90] sm:$0xff] }
   0x2   :  { %v25_v2 = vld [vmem:[%s2520_s2] sm:$0xff]  ;;  %v1495_v3 = vpack.c.bf16 %v42_v1, %v41_v0  ;;  %v26_v5 = vld [vmem:[%s2520_s2 + $0x8] sm:$0xff]  ;;  %v44_v11 = vld [vmem:[%s2520_s2 + $0x98] sm:$0xff] }
   0x3   :  { %v57_v6 = vld [vmem:[%s2520_s2 + $0x100] sm:$0xff]  ;;  %v58_v7 = vld [vmem:[%s2520_s2 + $0x108] sm:$0xff]  ;;  %v1497_v8 = vpack.c.bf16 %v26_v5, %v25_v2  ;;  %v27_v12 = vld [vmem:[%s2520_s2 + $0x10] sm:$0xff]  ;;  %v1499_v13 = vpack.c.bf16 %v44_v11, %v43_v10 }
   0x4   :  { %v1528_v9 = vpack.c.bf16 %v58_v7, %v57_v6  ;;  %1496 = vmatprep.subr.bf16.mxu0 %v1495_v3  ;;  %v28_v14 = vld [vmem:[%s2520_s2 + $0x18] sm:$0xff]  ;;  %v59_v15 = vld [vmem:[%s2520_s2 + $0x110] sm:$0xff]  ;;  %v45_v19 = vld [vmem:[%s2520_s2 + $0xa0] sm:$0xff] }
   0x5   :  { %v60_v16 = vld [vmem:[%s2520_s2 + $0x118] sm:$0xff]  ;;  %1498 = vmatpush3.bf16.msra.mxu0 %v1497_v8  ;;  %v1501_v17 = vpack.c.bf16 %v28_v14, %v27_v12  ;;  %v46_v20 = vld [vmem:[%s2520_s2 + $0xa8] sm:$0xff]  ;;  %v29_v21 = vld [vmem:[%s2520_s2 + $0x20] sm:$0xff] }
   0x6   :  { %1529 = vmatpush1.bf16.msra.mxu1 %v1528_v9  ;;  %v1531_v18 = vpack.c.bf16 %v60_v16, %v59_v15  ;;  %1500 = vmatprep.subr.bf16.mxu0 %v1499_v13  ;;  %v1503_v22 = vpack.c.bf16 %v46_v20, %v45_v19  ;;  %v30_v23 = vld [vmem:[%s2520_s2 + $0x28] sm:$0xff]  ;;  %v61_v24 = vld [vmem:[%s2520_s2 + $0x120] sm:$0xff]  ;;  %v47_v26 = vld [vmem:[%s2520_s2 + $0xb0] sm:$0xff] }
   0x7   :  { %1530 = vmatprep.subr.bf16.mxu1 %v1765_v4  ;;  %v62_v25 = vld [vmem:[%s2520_s2 + $0x128] sm:$0xff]  ;;  %v48_v27 = vld [vmem:[%s2520_s2 + $0xb8] sm:$0xff]  ;;  %v1505_v28 = vpack.c.bf16 %v30_v23, %v29_v21  ;;  %v31_v30 = vld [vmem:[%s2520_s2 + $0x30] sm:$0xff] }
   0x8   :  { %v1534_v29 = vpack.c.bf16 %v62_v25, %v61_v24  ;;  %v1507_v31 = vpack.c.bf16 %v48_v27, %v47_v26  ;;  %v32_v32 = vld [vmem:[%s2520_s2 + $0x38] sm:$0xff]  ;;  %v63_v33 = vld [vmem:[%s2520_s2 + $0x130] sm:$0xff]  ;;  %v49_v35 = vld [vmem:[%s2520_s2 + $0xc0] sm:$0xff] }
   0x9   :  { %1502 = vmatpush3.bf16.msra.mxu0 %v1501_v17  ;;  %v64_v34 = vld [vmem:[%s2520_s2 + $0x138] sm:$0xff]  ;;  %v50_v36 = vld [vmem:[%s2520_s2 + $0xc8] sm:$0xff]  ;;  %v1509_v37 = vpack.c.bf16 %v32_v32, %v31_v30  ;;  %v33_v39 = vld [vmem:[%s2520_s2 + $0x40] sm:$0xff] }
   0xa   :  { %1532 = vmatpush1.bf16.msra.mxu1 %v1531_v18  ;;  %1504 = vmatprep.subr.bf16.mxu0 %v1503_v22  ;;  %v1537_v38 = vpack.c.bf16 %v64_v34, %v63_v33  ;;  %v1511_v40 = vpack.c.bf16 %v50_v36, %v49_v35  ;;  %v34_v41 = vld [vmem:[%s2520_s2 + $0x48] sm:$0xff]  ;;  %v65_v42 = vld [vmem:[%s2520_s2 + $0x140] sm:$0xff]  ;;  %v51_v44 = vld [vmem:[%s2520_s2 + $0xd0] sm:$0xff] }
   0xb   :  { %1533 = vmatprep.subr.bf16.mxu1 %v1765_v4  ;;  %v66_v43 = vld [vmem:[%s2520_s2 + $0x148] sm:$0xff]  ;;  %v52_v45 = vld [vmem:[%s2520_s2 + $0xd8] sm:$0xff]  ;;  %v35_v46 = vld [vmem:[%s2520_s2 + $0x50] sm:$0xff]  ;;  %v1513_v47 = vpack.c.bf16 %v34_v41, %v33_v39 }
   0xc   :  { %v1540_v48 = vpack.c.bf16 %v66_v43, %v65_v42  ;;  %v36_v49 = vld [vmem:[%s2520_s2 + $0x58] sm:$0xff]  ;;  %v67_v50 = vld [vmem:[%s2520_s2 + $0x150] sm:$0xff]  ;;  %v18_v51 = vld [vmem:[%s2518_s0] sm:$0xff]  ;;  %v1515_v52 = vpack.c.bf16 %v52_v45, %v51_v44 }
   0xd   :  { %1506 = vmatpush3.bf16.msra.mxu0 %v1505_v28  ;;  %v68_v53 = vld [vmem:[%s2520_s2 + $0x158] sm:$0xff]  ;;  %v81_v54 = vcombine.high %v18_v51, %v18_v51  ;;  %v19_v55 = vld [vmem:[%s2518_s0 + $0x8] sm:$0xff] }
   0xe   :  { %1535 = vmatpush1.bf16.msra.mxu1 %v1534_v29  ;;  %1508 = vmatprep.subr.bf16.mxu0 %v1507_v31 }
   0xf   :  { %1536 = vmatprep.subr.bf16.mxu1 %v1765_v4 }
  0x11   :  { %1510 = vmatpush3.bf16.msra.mxu0 %v1509_v37 }
  0x12   :  { %1538 = vmatpush1.bf16.msra.mxu1 %v1537_v38  ;;  %1512 = vmatprep.subr.bf16.mxu0 %v1511_v40 }
  0x13   :  { %1539 = vmatprep.subr.bf16.mxu1 %v1765_v4 }
  0x14   :  { %9 = vsyncpa [#allocation3], 0  ;;  %v53_v56 = vld [vmem:[%s2520_s2 + $0xe0] sm:$0xff]  ;;  %v54_v57 = vld [vmem:[%s2520_s2 + $0xe8] sm:$0xff]  ;;  %v82_v58 = vcombine.high %v19_v55, %v19_v55  ;;  %151 = vmatprep.mubr.f32.mxu0 %v81_v54  ;;  %vm84_vm0 = vcmask 130048   ;;  %v1517_v59 = vpack.c.bf16 %v36_v49, %v35_v46  ;;  %v1543_v60 = vpack.c.bf16 %v68_v53, %v67_v50 }
  0x15   :  { %1514 = vmatpush3.bf16.msra.mxu0 %v1513_v47  ;;  %v37_v61 = vld [vmem:[%s2520_s2 + $0x60] sm:$0xff]  ;;  %v1519_v62 = vpack.c.bf16 %v54_v57, %v53_v56  ;;  %v38_v63 = vld [vmem:[%s2520_s2 + $0x68] sm:$0xff]  ;;  %v55_v2 = vld [vmem:[%s2520_s2 + $0xf0] sm:$0xff]  ;;  %vm1766_vm1 = vmmov 0   ;;  %v1767_v23 = vmov 0.0   ;;  %v75_v30 = vlaneseq }
  0x16   :  { %1541 = vmatpush1.bf16.msra.mxu1 %v1540_v48  ;;  %1516 = vmatprep.subr.bf16.mxu0 %v1515_v52  ;;  %v69_v0 = vld [vmem:[%s2520_s2 + $0x160] sm:$0xff]  ;;  %v70_v1 = vld [vmem:[%s2520_s2 + $0x168] sm:$0xff]  ;;  %v56_v3 = vld [vmem:[%s2520_s2 + $0xf8] sm:$0xff]  ;;  %v1521_v5 = vpack.c.bf16 %v38_v63, %v37_v61  ;;  %vm236_vm2 = vcmask 261120   ;;  %vm876_vm3 = vcmask 1043456   ;;  %vm1149_vm4 = vcmask 76800  }
  0x17   :  { %1542 = vmatprep.subr.bf16.mxu1 %v1765_v4  ;;  %1165 = vmatprep.mubr.msk.f32.mxu1 %vm84_vm0, %v82_v58  ;;  %v1546_v6 = vpack.c.bf16 %v70_v1, %v69_v0  ;;  %v39_v7 = vld [vmem:[%s2520_s2 + $0x70] sm:$0xff]  ;;  %v1523_v8 = vpack.c.bf16 %v56_v3, %v55_v2  ;;  %v40_v9 = vld [vmem:[%s2520_s2 + $0x78] sm:$0xff]  ;;  %v73_v14 = vld [vmem:[%s2520_s2 + $0x180] sm:$0xff]  ;;  %v1991_v31 = vshrl.u32 %v75_v30, 7 }
  0x18   :  { %v71_v10 = vld [vmem:[%s2520_s2 + $0x170] sm:$0xff]  ;;  %v72_v11 = vld [vmem:[%s2520_s2 + $0x178] sm:$0xff]  ;;  %v1525_v12 = vpack.c.bf16 %v40_v9, %v39_v7  ;;  %v74_v15 = vld [vmem:[%s2520_s2 + $0x188] sm:$0xff] }
  0x19   :  { %1518 = vmatpush3.bf16.msra.mxu0 %v1517_v59  ;;  %v1549_v13 = vpack.c.bf16 %v72_v11, %v71_v10  ;;  %v1552_v16 = vpack.c.bf16 %v74_v15, %v73_v14  ;;  %v228_v17 = vld [vmem:[%s2520_s2 + $0x490] sm:$0xff]  ;;  %v229_v18 = vld [vmem:[%s2520_s2 + $0x498] sm:$0xff]  ;;  %v230_v20 = vld [vmem:[%s2520_s2 + $0x4a0] sm:$0xff]  ;;  %v77_v32 = vsub.s32 0, %v1991_v31 }
  0x1a   :  { %1544 = vmatpush1.bf16.msra.mxu1 %v1543_v60  ;;  %1520 = vmatprep.subr.bf16.mxu0 %v1519_v62  ;;  %v1555_v19 = vpack.c.bf16 %v229_v18, %v228_v17  ;;  %v231_v21 = vld [vmem:[%s2520_s2 + $0x4a8] sm:$0xff]  ;;  %v408_v24 = vld [vmem:[%s2520_s2 + $0x210] sm:$0xff]  ;;  %v409_v25 = vld [vmem:[%s2520_s2 + $0x218] sm:$0xff] }
  0x1b   :  { %1545 = vmatprep.subr.bf16.mxu1 %v1765_v4  ;;  %v1558_v22 = vpack.c.bf16 %v231_v21, %v230_v20  ;;  %v1566_v26 = vpack.c.bf16 %v409_v25, %v408_v24  ;;  %v311_v27 = vld [vmem:[%s2521_s3] sm:$0xff]  ;;  %v312_v28 = vld [vmem:[%s2521_s3 + $0x8] sm:$0xff]  ;;  %v1997_v33 = vld [vmem:[%s2520_s2 + $0x5d0] sm:$0xff] }
  0x1c   :  { %v1561_v29 = vpack.c.bf16 %v312_v28, %v311_v27  ;;  %v78_v35 = vrot.slane %v1997_v33, %v77_v32  ;;  %v392_v40 = vld [vmem:[%s2520_s2 + $0x190] sm:$0xff]  ;;  %v393_v41 = vld [vmem:[%s2520_s2 + $0x198] sm:$0xff]  ;;  %v410_v43 = vld [vmem:[%s2520_s2 + $0x220] sm:$0xff] }
  0x1d   :  { %1522 = vmatpush3.bf16.msra.mxu0 %v1521_v5  ;;  %v411_v44 = vld [vmem:[%s2520_s2 + $0x228] sm:$0xff]  ;;  %v1568_v46 = vpack.c.bf16 %v393_v41, %v392_v40  ;;  %v394_v49 = vld [vmem:[%s2520_s2 + $0x1a0] sm:$0xff]  ;;  %v413_v52 = vld [vmem:[%s2520_s2 + $0x238] sm:$0xff] }
  0x1e   :  { %1547 = vmatpush1.bf16.msra.mxu1 %v1546_v6  ;;  %1524 = vmatprep.subr.bf16.mxu0 %v1523_v8  ;;  %v1570_v48 = vpack.c.bf16 %v411_v44, %v410_v43  ;;  %v395_v50 = vld [vmem:[%s2520_s2 + $0x1a8] sm:$0xff]  ;;  %v397_v56 = vld [vmem:[%s2520_s2 + $0x1b8] sm:$0xff]  ;;  %v414_v57 = vld [vmem:[%s2520_s2 + $0x240] sm:$0xff] }
  0x1f   :  { %1548 = vmatprep.subr.bf16.mxu1 %v1765_v4  ;;  %v1572_v53 = vpack.c.bf16 %v395_v50, %v394_v49  ;;  %v415_v58 = vld [vmem:[%s2520_s2 + $0x248] sm:$0xff]  ;;  %v398_v61 = vld [vmem:[%s2520_s2 + $0x1c0] sm:$0xff]  ;;  %v416_v63 = vld [vmem:[%s2520_s2 + $0x250] sm:$0xff] }
  0x20   :  { %v1578_v60 = vpack.c.bf16 %v415_v58, %v414_v57  ;;  %v399_v62 = vld [vmem:[%s2520_s2 + $0x1c8] sm:$0xff]  ;;  %v417_v0 = vld [vmem:[%s2520_s2 + $0x258] sm:$0xff]  ;;  %v400_v3 = vld [vmem:[%s2520_s2 + $0x1d0] sm:$0xff] }
  0x21   :  { %1526 = vmatpush3.bf16.msra.mxu0 %v1525_v12  ;;  %v1580_v1 = vpack.c.bf16 %v399_v62, %v398_v61  ;;  %v1582_v2 = vpack.c.bf16 %v417_v0, %v416_v63  ;;  %v401_v5 = vld [vmem:[%s2520_s2 + $0x1d8] sm:$0xff]  ;;  %v418_v6 = vld [vmem:[%s2520_s2 + $0x260] sm:$0xff]  ;;  %v419_v7 = vld [vmem:[%s2520_s2 + $0x268] sm:$0xff] }
  0x22   :  { %1550 = vmatpush1.bf16.msra.mxu1 %v1549_v13  ;;  %1554 = vmatprep.subr.bf16.mxu0 %v1765_v4  ;;  %v1584_v8 = vpack.c.bf16 %v401_v5, %v400_v3  ;;  %v1586_v9 = vpack.c.bf16 %v419_v7, %v418_v6  ;;  %v402_v10 = vld [vmem:[%s2520_s2 + $0x1e0] sm:$0xff]  ;;  %v403_v11 = vld [vmem:[%s2520_s2 + $0x1e8] sm:$0xff]  ;;  %v420_v12 = vld [vmem:[%s2520_s2 + $0x270] sm:$0xff] }
  0x23   :  { %1551 = vmatprep.subr.bf16.mxu1 %v1765_v4  ;;  %v421_v13 = vld [vmem:[%s2520_s2 + $0x278] sm:$0xff]  ;;  %v1588_v14 = vpack.c.bf16 %v403_v11, %v402_v10  ;;  %v422_v21 = vld [vmem:[%s2520_s2 + $0x280] sm:$0xff]  ;;  %v423_v24 = vld [vmem:[%s2520_s2 + $0x288] sm:$0xff] }
  0x24   :  { %152 = vmatmul.mubr.f32.vlgmr.msra.gmra.mrb[0].mxu0 %v18_v51  ;;  %v412_v51 = vld [vmem:[%s2520_s2 + $0x230] sm:$0xff]  ;;  %v1590_v15 = vpack.c.bf16 %v421_v13, %v420_v12  ;;  %v405_v17 = vld [vmem:[%s2520_s2 + $0x1f8] sm:$0xff]  ;;  %v406_v25 = vld [vmem:[%s2520_s2 + $0x200] sm:$0xff]  ;;  %v1594_v27 = vpack.c.bf16 %v423_v24, %v422_v21 }
  0x25   :  { %1556 = vmatpush3.bf16.msra.mxu0 %v1555_v19  ;;  %1378 = vmatprep.mubr.msk.f32.mxu0 %vm1766_vm1, %v1767_v23  ;;  %v1574_v54 = vpack.c.bf16 %v413_v52, %v412_v51  ;;  %v313_v19 = vld [vmem:[%s2521_s3 + $0x10] sm:$0xff]  ;;  %v314_v20 = vld [vmem:[%s2521_s3 + $0x18] sm:$0xff]  ;;  %v474_v43 = vld [vmem:[%s2520_s2 + $0x420] sm:$0xff] }
  0x26   :  { %1553 = vmatpush1.bf16.msra.mxu1 %v1552_v16  ;;  %1557 = vmatprep.subr.bf16.mxu0 %v1765_v4  ;;  %v404_v16 = vld [vmem:[%s2520_s2 + $0x1f0] sm:$0xff]  ;;  %v441_v30 = vld [vmem:[%s2520_s2 + $0x318] sm:$0xff]  ;;  %v475_v44 = vld [vmem:[%s2520_s2 + $0x428] sm:$0xff] }
  0x27   :  { %1560 = vmatprep.subr.bf16.mxu1 %v1765_v4  ;;  %v1592_v18 = vpack.c.bf16 %v405_v17, %v404_v16  ;;  %v456_v40 = vld [vmem:[%s2520_s2 + $0x390] sm:$0xff]  ;;  %v457_v41 = vld [vmem:[%s2520_s2 + $0x398] sm:$0xff]  ;;  %v462_v57 = vld [vmem:[%s2520_s2 + $0x3c0] sm:$0xff] }
  0x28   :  { %v476_v49 = vld [vmem:[%s2520_s2 + $0x430] sm:$0xff]  ;;  %v477_v50 = vld [vmem:[%s2520_s2 + $0x438] sm:$0xff]  ;;  %v463_v58 = vld [vmem:[%s2520_s2 + $0x3c8] sm:$0xff] }
  0x29   :  { %222 = vmatmul.mubr.f32.vlgmr.msra.gmra.mrb[0].mxu1 %v19_v55  ;;  %1559 = vmatpush3.bf16.msra.mxu0 %v1558_v22  ;;  %v396_v55 = vld [vmem:[%s2520_s2 + $0x1b0] sm:$0xff]  ;;  %v1564_v22 = vpack.c.bf16 %v314_v20, %v313_v19  ;;  %v461_v52 = vld [vmem:[%s2520_s2 + $0x3b8] sm:$0xff]  ;;  %v482_v3 = vld [vmem:[%s2520_s2 + $0x460] sm:$0xff] }
  0x2a   :  { %1389 = vmatprep.mubr.msk.f32.mxu1 %vm1766_vm1, %v1767_v23  ;;  %1567 = vmatprep.subr.bf16.mxu0 %v1566_v26  ;;  %v1576_v59 = vpack.c.bf16 %v397_v56, %v396_v55  ;;  %v407_v26 = vld [vmem:[%s2520_s2 + $0x208] sm:$0xff]  ;;  %v460_v51 = vld [vmem:[%s2520_s2 + $0x3b0] sm:$0xff]  ;;  %v478_v55 = vld [vmem:[%s2520_s2 + $0x440] sm:$0xff] }
  0x2b   :  { %1562 = vmatpush3.bf16.msra.mxu1 %v1561_v29  ;;  %v1596_v28 = vpack.c.bf16 %v407_v26, %v406_v25  ;;  %v440_v29 = vld [vmem:[%s2520_s2 + $0x310] sm:$0xff]  ;;  %v479_v56 = vld [vmem:[%s2520_s2 + $0x448] sm:$0xff]  ;;  %v481_v62 = vld [vmem:[%s2520_s2 + $0x458] sm:$0xff]  ;;  %v234_v25 = vsub.s32 1, %v1991_v31 }
  0x2c   :  { %1563 = vmatprep.subr.bf16.mxu1 %v1765_v4  ;;  %v480_v61 = vld [vmem:[%s2520_s2 + $0x450] sm:$0xff]  ;;  %v465_v0 = vld [vmem:[%s2520_s2 + $0x3d8] sm:$0xff]  ;;  %v483_v5 = vld [vmem:[%s2520_s2 + $0x468] sm:$0xff] }
  0x2d   :  { %v464_v63 = vld [vmem:[%s2520_s2 + $0x3d0] sm:$0xff]  ;;  %v466_v6 = vld [vmem:[%s2520_s2 + $0x3e0] sm:$0xff]  ;;  %v467_v7 = vld [vmem:[%s2520_s2 + $0x3e8] sm:$0xff]  ;;  %v235_v26 = vrot.slane %v1997_v33, %v234_v25 }
  0x2e   :  { %v484_v10 = vld [vmem:[%s2520_s2 + $0x470] sm:$0xff]  ;;  %v485_v11 = vld [vmem:[%s2520_s2 + $0x478] sm:$0xff]  ;;  %v486_v16 = vld [vmem:[%s2520_s2 + $0x480] sm:$0xff] }
  0x2f   :  { %1565 = vmatpush3.bf16.msra.mxu1 %v1564_v22  ;;  %v468_v12 = vld [vmem:[%s2520_s2 + $0x3f0] sm:$0xff]  ;;  %v469_v13 = vld [vmem:[%s2520_s2 + $0x3f8] sm:$0xff]  ;;  %v487_v17 = vld [vmem:[%s2520_s2 + $0x488] sm:$0xff] }
  0x30   :  { %v471_v19 = vld [vmem:[%s2520_s2 + $0x408] sm:$0xff]  ;;  %v1658_v20 = vpack.c.bf16 %v487_v17, %v486_v16  ;;  %v22_v22 = vld [vmem:[%s2519_s1 + $0x10] sm:$0xff] }
  0x31   :  { %v497_v24 = vcombine.high %v22_v22, %v22_v22  ;;  %v439_v16 = vld [vmem:[%s2520_s2 + $0x308] sm:$0xff] }
  0xf7   :  { %v1203_v34 = vpop.f32.mrb[0].mxu0 }
  0xf8   :  { %v1204_v36 = vpop.f32.mrb[1].mxu0 }
  0xf9   :  { %v1205_v37 = vadd.f32 %v1204_v36, %v1203_v34  ;;  %v1598_v34 = vpack.c.bf16 %v441_v30, %v440_v29  ;;  %v2223_v29 = vld [vmem:[%s2519_s1 + $0x8] sm:$0xff] }
  0xfb   :  { %v154_v38 = vadd.f32 %v1205_v37, %v78_v35  ;;  %v20_v35 = vld [vmem:[%s2519_s1] sm:$0xff]  ;;  %v472_v37 = vld [vmem:[%s2520_s2 + $0x410] sm:$0xff]  ;;  %1599 = vmatprep.subr.bf16.mxu1 %v1598_v34  ;;  %s1768_s1 = smov [#allocation2]  }
  0xfc   :  { %v223_v39 = vpop.f32.mrb[0].mxu1  ;;  %v495_v36 = vcombine.high %v20_v35, %v20_v35  ;;  %v442_v34 = vld [vmem:[%s2520_s2 + $0x320] sm:$0xff]  ;;  %s1157_s17 = sshll.u32 %s1768_s1, 4  ;;  %s1158_s17 = int_to_ptr.vmem [resolvable:$true] %s1157_s17 }
  0xfd   :  { %v225_v42 = vpop.f32.mrb[1].mxu1  ;;  %v224_v45 = vadd.f32 %v223_v39, %v154_v38  ;;  %v473_v38 = vld [vmem:[%s2520_s2 + $0x418] sm:$0xff]  ;;  %p1746_p1 = scmp.lt.s32.totalorder %s1158_s17, %s1158_s17 }
  0xfe   :  { %v1630_v39 = vpack.c.bf16 %v473_v38, %v472_v37  ;;  %v1632_v42 = vpack.c.bf16 %v457_v41, %v456_v40 }
  0xff   :  { %v227_v47 = vmax.f32 %v224_v45, 0.0  ;;  %v458_v45 = vld [vmem:[%s2520_s2 + $0x3a0] sm:$0xff] }
 0x101   :  { %1379 = vmatmul.mubr.msk.f32.vlgmr.msra.gmra.mrb[2].mxu0 %vm236_vm2, %v227_v47  ;;  %v1634_v47 = vpack.c.bf16 %v475_v44, %v474_v43  ;;  %v427_v43 = vld [vmem:[%s2520_s2 + $0x2a8] sm:$0xff]  ;;  %v444_v44 = vld [vmem:[%s2520_s2 + $0x330] sm:$0xff] }
 0x102   :  { %1569 = vmatpush3.bf16.msra.mxu0 %v1568_v46  ;;  %565 = vmatprep.mubr.f32.mxu0 %v495_v36  ;;  %v459_v46 = vld [vmem:[%s2520_s2 + $0x3a8] sm:$0xff] }
 0x103   :  { %1571 = vmatprep.subr.bf16.mxu0 %v1570_v48  ;;  %v1636_v48 = vpack.c.bf16 %v459_v46, %v458_v45  ;;  %v445_v45 = vld [vmem:[%s2520_s2 + $0x338] sm:$0xff] }
 0x106   :  { %1573 = vmatpush3.bf16.msra.mxu0 %v1572_v53  ;;  %v1638_v53 = vpack.c.bf16 %v477_v50, %v476_v49  ;;  %v429_v49 = vld [vmem:[%s2520_s2 + $0x2b8] sm:$0xff]  ;;  %v446_v50 = vld [vmem:[%s2520_s2 + $0x340] sm:$0xff] }
 0x107   :  { %1575 = vmatprep.subr.bf16.mxu0 %v1574_v54  ;;  %v1640_v54 = vpack.c.bf16 %v461_v52, %v460_v51  ;;  %v447_v51 = vld [vmem:[%s2520_s2 + $0x348] sm:$0xff] }
 0x10a   :  { %1577 = vmatpush3.bf16.msra.mxu0 %v1576_v59  ;;  %v1642_v59 = vpack.c.bf16 %v479_v56, %v478_v55  ;;  %v431_v55 = vld [vmem:[%s2520_s2 + $0x2c8] sm:$0xff]  ;;  %v448_v56 = vld [vmem:[%s2520_s2 + $0x350] sm:$0xff] }
 0x10b   :  { %1579 = vmatprep.subr.bf16.mxu0 %v1578_v60  ;;  %v1644_v60 = vpack.c.bf16 %v463_v58, %v462_v57  ;;  %v449_v57 = vld [vmem:[%s2520_s2 + $0x358] sm:$0xff] }
 0x10e   :  { %1581 = vmatpush3.bf16.msra.mxu0 %v1580_v1  ;;  %v1646_v1 = vpack.c.bf16 %v481_v62, %v480_v61  ;;  %v433_v61 = vld [vmem:[%s2520_s2 + $0x2d8] sm:$0xff]  ;;  %v450_v62 = vld [vmem:[%s2520_s2 + $0x360] sm:$0xff] }
 0x10f   :  { %1583 = vmatprep.subr.bf16.mxu0 %v1582_v2  ;;  %v1648_v2 = vpack.c.bf16 %v465_v0, %v464_v63  ;;  %v451_v63 = vld [vmem:[%s2520_s2 + $0x368] sm:$0xff] }
 0x112   :  { %1585 = vmatpush3.bf16.msra.mxu0 %v1584_v8  ;;  %v1650_v8 = vpack.c.bf16 %v483_v5, %v482_v3  ;;  %v435_v3 = vld [vmem:[%s2520_s2 + $0x2e8] sm:$0xff]  ;;  %v452_v5 = vld [vmem:[%s2520_s2 + $0x370] sm:$0xff] }
 0x113   :  { %1587 = vmatprep.subr.bf16.mxu0 %v1586_v9  ;;  %v1652_v9 = vpack.c.bf16 %v467_v7, %v466_v6  ;;  %v453_v6 = vld [vmem:[%s2520_s2 + $0x378] sm:$0xff] }
 0x116   :  { %1589 = vmatpush3.bf16.msra.mxu0 %v1588_v14  ;;  %v1654_v14 = vpack.c.bf16 %v485_v11, %v484_v10  ;;  %v437_v10 = vld [vmem:[%s2520_s2 + $0x2f8] sm:$0xff]  ;;  %v454_v11 = vld [vmem:[%s2520_s2 + $0x380] sm:$0xff] }
 0x117   :  { %1591 = vmatprep.subr.bf16.mxu0 %v1590_v15  ;;  %v1656_v15 = vpack.c.bf16 %v469_v13, %v468_v12  ;;  %v455_v12 = vld [vmem:[%s2520_s2 + $0x388] sm:$0xff] }
 0x11a   :  { %1593 = vmatpush3.bf16.msra.mxu0 %v1592_v18  ;;  %v470_v18 = vld [vmem:[%s2520_s2 + $0x400] sm:$0xff] }
 0x11b   :  { %1595 = vmatprep.subr.bf16.mxu0 %v1594_v27  ;;  %v1660_v21 = vpack.c.bf16 %v471_v19, %v470_v18  ;;  %v424_v27 = vld [vmem:[%s2520_s2 + $0x290] sm:$0xff] }
 0x11e   :  { %1597 = vmatpush3.bf16.msra.mxu0 %v1596_v28  ;;  %v425_v28 = vld [vmem:[%s2520_s2 + $0x298] sm:$0xff] }
 0x11f   :  { %1631 = vmatprep.subr.bf16.mxu0 %v1630_v39  ;;  %v1600_v38 = vpack.c.bf16 %v425_v28, %v424_v27  ;;  %v496_v39 = vcombine.high %v2223_v29, %v2223_v29 }
 0x121   :  { %566 = vmatmul.mubr.f32.vlgmr.msra.gmra.mrb[4].mxu0 %v20_v35  ;;  %v443_v35 = vld [vmem:[%s2520_s2 + $0x328] sm:$0xff] }
 0x122   :  { %1633 = vmatpush3.bf16.msra.mxu0 %v1632_v42  ;;  %705 = vmatprep.mubr.f32.mxu0 %v497_v24  ;;  %v1602_v41 = vpack.c.bf16 %v443_v35, %v442_v34  ;;  %v426_v42 = vld [vmem:[%s2520_s2 + $0x2a0] sm:$0xff] }
 0x123   :  { %1635 = vmatprep.subr.bf16.mxu0 %v1634_v47  ;;  %v1604_v46 = vpack.c.bf16 %v427_v43, %v426_v42  ;;  %v1606_v47 = vpack.c.bf16 %v445_v45, %v444_v44  ;;  %v2333_v35 = vld [vmem:[%s2521_s3 + $0x60] sm:$0xff]  ;;  %v490_v42 = vsub.s32 2, %v1991_v31 }
 0x125   :  { %v491_v43 = vrot.slane %v1997_v33, %v490_v42 }
 0x126   :  { %1637 = vmatpush3.bf16.msra.mxu0 %v1636_v48  ;;  %v428_v48 = vld [vmem:[%s2520_s2 + $0x2b0] sm:$0xff] }
 0x127   :  { %1639 = vmatprep.subr.bf16.mxu0 %v1638_v53  ;;  %v1608_v52 = vpack.c.bf16 %v429_v49, %v428_v48  ;;  %v1610_v53 = vpack.c.bf16 %v447_v51, %v446_v50  ;;  %v794_v48 = vld [vmem:[%s2521_s3 + $0x20] sm:$0xff]  ;;  %v795_v49 = vld [vmem:[%s2521_s3 + $0x28] sm:$0xff] }
 0x128   :  { %v1669_v51 = vpack.c.bf16 %v795_v49, %v794_v48 }
 0x12a   :  { %1641 = vmatpush3.bf16.msra.mxu0 %v1640_v54  ;;  %v430_v54 = vld [vmem:[%s2520_s2 + $0x2c0] sm:$0xff] }
 0x12b   :  { %1643 = vmatprep.subr.bf16.mxu0 %v1642_v59  ;;  %v1612_v58 = vpack.c.bf16 %v431_v55, %v430_v54  ;;  %v1614_v59 = vpack.c.bf16 %v449_v57, %v448_v56  ;;  %v797_v54 = vld [vmem:[%s2521_s3 + $0x38] sm:$0xff]  ;;  %v718_v56 = vsub.s32 3, %v1991_v31 }
 0x12d   :  { %v719_v57 = vrot.slane %v1997_v33, %v718_v56  ;;  %v903_v56 = vld [vmem:[%s2520_s2 + $0x538] sm:$0xff] }
 0x12e   :  { %1645 = vmatpush3.bf16.msra.mxu0 %v1644_v60  ;;  %v432_v60 = vld [vmem:[%s2520_s2 + $0x2d0] sm:$0xff] }
 0x12f   :  { %1647 = vmatprep.subr.bf16.mxu0 %v1646_v1  ;;  %v1616_v0 = vpack.c.bf16 %v433_v61, %v432_v60  ;;  %v1618_v1 = vpack.c.bf16 %v451_v63, %v450_v62 }
 0x132   :  { %1649 = vmatpush3.bf16.msra.mxu0 %v1648_v2  ;;  %v434_v2 = vld [vmem:[%s2520_s2 + $0x2e0] sm:$0xff] }
 0x133   :  { %1651 = vmatprep.subr.bf16.mxu0 %v1650_v8  ;;  %v1620_v7 = vpack.c.bf16 %v435_v3, %v434_v2  ;;  %v1622_v8 = vpack.c.bf16 %v453_v6, %v452_v5  ;;  %v909_v2 = vld [vmem:[%s2520_s2 + $0x568] sm:$0xff]  ;;  %v910_v5 = vld [vmem:[%s2520_s2 + $0x570] sm:$0xff]  ;;  %v911_v6 = vld [vmem:[%s2520_s2 + $0x578] sm:$0xff] }
 0x136   :  { %1653 = vmatpush3.bf16.msra.mxu0 %v1652_v9  ;;  %v436_v9 = vld [vmem:[%s2520_s2 + $0x2f0] sm:$0xff] }
 0x137   :  { %1655 = vmatprep.subr.bf16.mxu0 %v1654_v14  ;;  %v1624_v13 = vpack.c.bf16 %v437_v10, %v436_v9  ;;  %v1626_v14 = vpack.c.bf16 %v455_v12, %v454_v11  ;;  %v913_v9 = vld [vmem:[%s2520_s2 + $0x588] sm:$0xff]  ;;  %v914_v12 = vld [vmem:[%s2520_s2 + $0x590] sm:$0xff] }
 0x13a   :  { %1657 = vmatpush3.bf16.msra.mxu0 %v1656_v15  ;;  %v438_v15 = vld [vmem:[%s2520_s2 + $0x300] sm:$0xff] }
 0x13b   :  { %1659 = vmatprep.subr.bf16.mxu0 %v1658_v20  ;;  %v1628_v17 = vpack.c.bf16 %v439_v16, %v438_v15  ;;  %v916_v16 = vld [vmem:[%s2520_s2 + $0x5a0] sm:$0xff] }
 0x13e   :  { %1661 = vmatpush3.bf16.msra.mxu0 %v1660_v21  ;;  %v712_v21 = vld [vmem:[%s2520_s2 + $0x4b0] sm:$0xff] }
 0x13f   :  { %1698 = vmatprep.subr.bf16.mxu0 %v1765_v4 }
 0x141   :  { %706 = vmatmul.mubr.f32.vlgmr.msra.gmra.mrb[6].mxu0 %v22_v22  ;;  %v713_v22 = vld [vmem:[%s2520_s2 + $0x4b8] sm:$0xff] }
 0x142   :  { %1481 = vmatprep.mubr.msk.f32.mxu0 %vm1766_vm1, %v1767_v23  ;;  %v1663_v24 = vpack.c.bf16 %v713_v22, %v712_v21  ;;  %v920_v22 = vld [vmem:[%s2520_s2 + $0x5c0] sm:$0xff] }
 0x1d4   :  { %v306_v30 = vpop.f32.mrb[2].mxu0 }
 0x1d5   :  { %v307_v36 = vadd.f32 %v306_v30, %v235_v26  ;;  %v1380_v37 = vpop.f32.mrb[3].mxu0  ;;  %v715_v30 = vld [vmem:[%s2520_s2 + $0x4c8] sm:$0xff] }
 0x1d7   :  { %v310_v40 = vmax.f32 %v307_v36, 0.0  ;;  %v318_v36 = vrot.slane %v2333_v35, %v77_v32 }
 0x1d9   :  { %1390 = vmatmul.mubr.msk.f32.vlgmr.msra.gmra.mrb[2].mxu1 %vm236_vm2, %v310_v40 }
 0x1da   :  { %1601 = vmatpush3.bf16.msra.mxu1 %v1600_v38  ;;  %635 = vmatprep.mubr.f32.mxu1 %v496_v39 }
 0x1db   :  { %1603 = vmatprep.subr.bf16.mxu1 %v1602_v41 }
 0x1de   :  { %1605 = vmatpush3.bf16.msra.mxu1 %v1604_v46 }
 0x1df   :  { %1607 = vmatprep.subr.bf16.mxu1 %v1606_v47 }
 0x1e2   :  { %1609 = vmatpush3.bf16.msra.mxu1 %v1608_v52 }
 0x1e3   :  { %1611 = vmatprep.subr.bf16.mxu1 %v1610_v53  ;;  %v796_v53 = vld [vmem:[%s2521_s3 + $0x30] sm:$0xff] }
 0x1e4   :  { %v1672_v55 = vpack.c.bf16 %v797_v54, %v796_v53  ;;  %v901_v53 = vld [vmem:[%s2520_s2 + $0x528] sm:$0xff]  ;;  %v902_v54 = vld [vmem:[%s2520_s2 + $0x530] sm:$0xff] }
 0x1e6   :  { %1613 = vmatpush3.bf16.msra.mxu1 %v1612_v58  ;;  %v906_v58 = vld [vmem:[%s2520_s2 + $0x550] sm:$0xff] }
 0x1e7   :  { %1615 = vmatprep.subr.bf16.mxu1 %v1614_v59  ;;  %v907_v59 = vld [vmem:[%s2520_s2 + $0x558] sm:$0xff] }
 0x1e8   :  { %v1675_v63 = vpack.c.bf16 %v907_v59, %v906_v58  ;;  %v904_v58 = vld [vmem:[%s2520_s2 + $0x540] sm:$0xff]  ;;  %v905_v59 = vld [vmem:[%s2520_s2 + $0x548] sm:$0xff] }
 0x1ea   :  { %1617 = vmatpush3.bf16.msra.mxu1 %v1616_v0 }
 0x1eb   :  { %1619 = vmatprep.subr.bf16.mxu1 %v1618_v1  ;;  %v908_v1 = vld [vmem:[%s2520_s2 + $0x560] sm:$0xff] }
 0x1ec   :  { %v1678_v3 = vpack.c.bf16 %v909_v2, %v908_v1 }
 0x1ee   :  { %1621 = vmatpush3.bf16.msra.mxu1 %v1620_v7  ;;  %v1681_v7 = vpack.c.bf16 %v911_v6, %v910_v5  ;;  %v1069_v5 = vld [vmem:[%s2521_s3 + $0x48] sm:$0xff] }
 0x1ef   :  { %1623 = vmatprep.subr.bf16.mxu1 %v1622_v8  ;;  %v912_v8 = vld [vmem:[%s2520_s2 + $0x580] sm:$0xff] }
 0x1f0   :  { %v1684_v10 = vpack.c.bf16 %v913_v9, %v912_v8  ;;  %v1071_v8 = vld [vmem:[%s2521_s3 + $0x58] sm:$0xff] }
 0x1f2   :  { %1625 = vmatpush3.bf16.msra.mxu1 %v1624_v13  ;;  %v915_v13 = vld [vmem:[%s2520_s2 + $0x598] sm:$0xff] }
 0x1f3   :  { %1627 = vmatprep.subr.bf16.mxu1 %v1626_v14  ;;  %v1687_v15 = vpack.c.bf16 %v915_v13, %v914_v12 }
 0x1f4   :  { %v1248_v18 = vpop.f32.mrb[4].mxu0 }
 0x1f5   :  { %v1249_v19 = vpop.f32.mrb[5].mxu0 }
 0x1f6   :  { %1629 = vmatpush3.bf16.msra.mxu1 %v1628_v17  ;;  %v1250_v20 = vadd.f32 %v1249_v19, %v1248_v18  ;;  %v917_v17 = vld [vmem:[%s2520_s2 + $0x5a8] sm:$0xff]  ;;  %v918_v19 = vld [vmem:[%s2520_s2 + $0x5b0] sm:$0xff] }
 0x1f7   :  { %1662 = vmatprep.subr.bf16.mxu1 %v1765_v4  ;;  %v1690_v18 = vpack.c.bf16 %v917_v17, %v916_v16 }
 0x1f8   :  { %v568_v32 = vadd.f32 %v1250_v20, %v491_v43  ;;  %v919_v20 = vld [vmem:[%s2520_s2 + $0x5b8] sm:$0xff]  ;;  %v897_v43 = vld [vmem:[%s2520_s2 + $0x508] sm:$0xff] }
 0x1f9   :  { %636 = vmatmul.mubr.f32.vlgmr.msra.gmra.mrb[4].mxu1 %v2223_v29  ;;  %v714_v29 = vld [vmem:[%s2520_s2 + $0x4c0] sm:$0xff]  ;;  %v1693_v21 = vpack.c.bf16 %v919_v20, %v918_v19 }
 0x1fa   :  { %1400 = vmatprep.mubr.msk.f32.mxu1 %vm1766_vm1, %v1767_v23  ;;  %1664 = vmatpush3.bf16.msra.mxu1 %v1663_v24  ;;  %v1666_v34 = vpack.c.bf16 %v715_v30, %v714_v29  ;;  %v921_v24 = vld [vmem:[%s2520_s2 + $0x5c8] sm:$0xff]  ;;  %v890_v29 = vld [vmem:[%s2520_s2 + $0x4d0] sm:$0xff]  ;;  %v891_v30 = vld [vmem:[%s2520_s2 + $0x4d8] sm:$0xff] }
 0x1fb   :  { %1665 = vmatprep.subr.bf16.mxu1 %v1765_v4 }
 0x1fe   :  { %1667 = vmatpush3.bf16.msra.mxu1 %v1666_v34  ;;  %v892_v34 = vld [vmem:[%s2520_s2 + $0x4e0] sm:$0xff] }
 0x1ff   :  { %1668 = vmatprep.subr.bf16.mxu1 %v1765_v4 }
 0x214   :  { %v1318_v26 = vpop.f32.mrb[6].mxu0 }
 0x215   :  { %v1319_v27 = vpop.f32.mrb[7].mxu0 }
 0x216   :  { %v1320_v28 = vadd.f32 %v1319_v27, %v1318_v26  ;;  %v1696_v26 = vpack.c.bf16 %v921_v24, %v920_v22 }
 0x2ac   :  { %v388_v37 = vpop.f32.mrb[2].mxu1 }
 0x2ad   :  { %v2338_v38 = vadd.f32 %v388_v37, %v318_v36  ;;  %v1391_v39 = vpop.f32.mrb[3].mxu1  ;;  %v1699_v36 = vpack.c.bf16 %v891_v30, %v890_v29  ;;  %v893_v37 = vld [vmem:[%s2520_s2 + $0x4e8] sm:$0xff] }
 0x2ae   :  { %v895_v39 = vld [vmem:[%s2520_s2 + $0x4f8] sm:$0xff] }
 0x2af   :  { %v875_v40 = vmul.f32 %v2338_v38, %v2338_v38  ;;  %1700 = vmatpush3.bf16.msra.mxu0 %v1699_v36 }
 0x2b0   :  { %1701 = vmatprep.subr.bf16.mxu0 %v1765_v4 }
 0x2b1   :  { %v877_v41 = vsel %vm876_vm3, %v875_v40, 0.0 }
 0x2b2   :  { %878 = vadd.xlane.f32.xlu0 %v877_v41  ;;  %v896_v41 = vld [vmem:[%s2520_s2 + $0x500] sm:$0xff] }
 0x2cc   :  { %v1283_v44 = vpop.f32.mrb[4].mxu1 }
 0x2cd   :  { %v1284_v45 = vpop.f32.mrb[5].mxu1 }
 0x2ce   :  { %v1285_v46 = vadd.f32 %v1284_v45, %v1283_v44  ;;  %v1708_v44 = vpack.c.bf16 %v897_v43, %v896_v41  ;;  %v801_v45 = vrot.slane %v2333_v35, %v234_v25  ;;  %v900_v25 = vld [vmem:[%s2520_s2 + $0x520] sm:$0xff] }
 0x2d0   :  { %v638_v47 = vadd.f32 %v1285_v46, %v568_v32 }
 0x2d2   :  { %v708_v50 = vadd.f32 %v1320_v28, %v638_v47 }
 0x2d4   :  { %v711_v52 = vmax.f32 %v708_v50, 0.0  ;;  %v898_v50 = vld [vmem:[%s2520_s2 + $0x510] sm:$0xff] }
 0x2d6   :  { %1401 = vmatmul.mubr.msk.f32.vlgmr.msra.gmra.mrb[6].mxu1 %vm236_vm2, %v711_v52 }
 0x2d7   :  { %1670 = vmatpush3.bf16.msra.mxu1 %v1669_v51  ;;  %1411 = vmatprep.mubr.msk.f32.mxu1 %vm1766_vm1, %v1767_v23  ;;  %v899_v51 = vld [vmem:[%s2520_s2 + $0x518] sm:$0xff] }
 0x2d8   :  { %1671 = vmatprep.subr.bf16.mxu1 %v1765_v4  ;;  %v1711_v52 = vpack.c.bf16 %v899_v51, %v898_v50 }
 0x2db   :  { %1673 = vmatpush3.bf16.msra.mxu1 %v1672_v55  ;;  %v1714_v55 = vpack.c.bf16 %v901_v53, %v900_v25 }
 0x2dc   :  { %1674 = vmatprep.subr.bf16.mxu1 %v1765_v4 }
 0x33f   :  { %v879_v11 = vpop.xlane.xlu0 %878 }
 0x340   :  { %v880_v14 = vmax.f32 %v879_v11, 1e-24 }
 0x342   :  { %1737 = vrsqrt.f32 %v880_v14 }
 0x34c   :  { %v1738_v27 = vpop.eup %1737 }
 0x34d   :  { %v882_v28 = vmul.f32 %v1738_v27, %v2338_v38  ;;  %v1702_v38 = vpack.c.bf16 %v893_v37, %v892_v34 }
 0x34f   :  { %1703 = vmatpush3.bf16.msra.mxu0 %v1702_v38 }
 0x350   :  { %1704 = vmatprep.subr.bf16.mxu0 %v1765_v4 }
 0x3a9   :  { %v789_v60 = vpop.f32.mrb[6].mxu1 }
 0x3aa   :  { %v790_v61 = vadd.f32 %v789_v60, %v719_v57  ;;  %v1402_v62 = vpop.f32.mrb[7].mxu1  ;;  %v1717_v57 = vpack.c.bf16 %v903_v56, %v902_v54  ;;  %v1720_v60 = vpack.c.bf16 %v905_v59, %v904_v58 }
 0x3ac   :  { %v793_v0 = vmax.f32 %v790_v61, 0.0 }
 0x3ae   :  { %1412 = vmatmul.mubr.msk.f32.vlgmr.msra.gmra.mrb[8].mxu1 %vm236_vm2, %v793_v0 }
 0x3af   :  { %1676 = vmatpush3.bf16.msra.mxu1 %v1675_v63  ;;  %1446 = vmatprep.mubr.msk.f32.mxu1 %vm1766_vm1, %v1767_v23 }
 0x3b0   :  { %1677 = vmatprep.subr.bf16.mxu1 %v1765_v4 }
 0x3b3   :  { %1679 = vmatpush3.bf16.msra.mxu1 %v1678_v3  ;;  %v1068_v3 = vld [vmem:[%s2521_s3 + $0x40] sm:$0xff] }
 0x3b4   :  { %1680 = vmatprep.subr.bf16.mxu1 %v1765_v4  ;;  %v1723_v6 = vpack.c.bf16 %v1069_v5, %v1068_v3 }
 0x3b7   :  { %1682 = vmatpush3.bf16.msra.mxu1 %v1681_v7  ;;  %v1070_v7 = vld [vmem:[%s2521_s3 + $0x50] sm:$0xff]  ;;  %s1741_s3 = scalar_lea.vmem %s1158_s17, 64 }
 0x3b8   :  { %1683 = vmatprep.subr.bf16.mxu1 %v1765_v4  ;;  %v1726_v9 = vpack.c.bf16 %v1071_v8, %v1070_v7  ;;  %p1742_p0 = scmp.ne.s32.totalorder %s1158_s17, %s1741_s3  ;;  %p1747_p2 = scmp.lt.s32.totalorder %s1741_s3, %s1741_s3 }
 0x3ba   :  { %p1748_p3 = por %p1747_p2, %p1746_p1 }
 0x3bb   :  { %1685 = vmatpush3.bf16.msra.mxu1 %v1684_v10  ;;  %v1064_v10 = vsub.s32 4, %v1991_v31 }
 0x3bc   :  { %1686 = vmatprep.subr.bf16.mxu1 %v1765_v4  ;;  %p1749_p4 = pnand %p1748_p3, %p1742_p0 }
 0x3bd   :  { %v1065_v11 = vrot.slane %v1997_v33, %v1064_v10 }
 0x3bf   :  { %1688 = vmatpush3.bf16.msra.mxu1 %v1687_v15 }
 0x3c0   :  { %1689 = vmatprep.subr.bf16.mxu1 %v1765_v4 }
 0x3c3   :  { %1691 = vmatpush3.bf16.msra.mxu1 %v1690_v18 }
 0x3c4   :  { %1692 = vmatprep.subr.bf16.mxu1 %v1765_v4 }
 0x3c7   :  { %1694 = vmatpush3.bf16.msra.mxu1 %v1693_v21 }
 0x3c8   :  { %1695 = vmatprep.subr.bf16.mxu1 %v1765_v4 }
 0x3cb   :  { %1697 = vmatpush3.bf16.msra.mxu1 %v1696_v26 }
 0x3cc   :  { %1722 = vmatprep.subr.bf16.mxu1 %v1765_v4 }
 0x3ce   :  { %1447 = vmatmul.mubr.f32.vlgmr.msra.gmra.mrb[10].mxu1 %v882_v28 }
 0x3cf   :  { %1492 = vmatprep.mubr.msk.f32.mxu1 %vm1766_vm1, %v1767_v23  ;;  %v894_v23 = vld [vmem:[%s2520_s2 + $0x4f0] sm:$0xff]  ;;  %1724 = vmatpush3.bf16.msra.mxu1 %v1723_v6 }
 0x3d0   :  { %v1705_v40 = vpack.c.bf16 %v895_v39, %v894_v23  ;;  %1725 = vmatprep.subr.bf16.mxu1 %v1765_v4 }
 0x3d2   :  { %1706 = vmatpush3.bf16.msra.mxu0 %v1705_v40 }
 0x3d3   :  { %1707 = vmatprep.subr.bf16.mxu0 %v1765_v4  ;;  %1727 = vmatpush3.bf16.msra.mxu1 %v1726_v9 }
 0x3d6   :  { %1709 = vmatpush3.bf16.msra.mxu0 %v1708_v44 }
 0x3d7   :  { %1710 = vmatprep.subr.bf16.mxu0 %v1765_v4 }
 0x3da   :  { %1712 = vmatpush3.bf16.msra.mxu0 %v1711_v52 }
 0x3db   :  { %1713 = vmatprep.subr.bf16.mxu0 %v1765_v4 }
 0x3de   :  { %1715 = vmatpush3.bf16.msra.mxu0 %v1714_v55 }
 0x3df   :  { %1716 = vmatprep.subr.bf16.mxu0 %v1765_v4 }
 0x3e2   :  { %1718 = vmatpush3.bf16.msra.mxu0 %v1717_v57 }
 0x3e3   :  { %1719 = vmatprep.subr.bf16.mxu0 %v1765_v4  ;;  %v1075_v4 = vrot.slane %v2333_v35, %v490_v42 }
 0x3e6   :  { %1721 = vmatpush3.bf16.msra.mxu0 %v1720_v60 }
 0x481   :  { %v871_v32 = vpop.f32.mrb[8].mxu1 }
 0x482   :  { %v872_v46 = vadd.f32 %v871_v32, %v801_v45  ;;  %v1413_v47 = vpop.f32.mrb[9].mxu1 }
 0x484   :  { %v883_v48 = vmul.f32 %v872_v46, %v872_v46 }
 0x486   :  { %v884_v49 = vsel %vm876_vm3, %v883_v48, 0.0 }
 0x487   :  { %885 = vadd.xlane.f32.xlu0 %v884_v49 }
 0x4a1   :  { %v988_v61 = vpop.f32.mrb[10].mxu1 }
 0x4a2   :  { %v1448_v62 = vpop.f32.mrb[11].mxu1 }
 0x514   :  { %v886_v63 = vpop.xlane.xlu0 %885 }
 0x515   :  { %v887_v0 = vmax.f32 %v886_v63, 1e-24 }
 0x517   :  { %1739 = vrsqrt.f32 %v887_v0 }
 0x521   :  { %v1740_v1 = vpop.eup %1739 }
 0x522   :  { %v889_v2 = vmul.f32 %v1740_v1, %v872_v46 }
 0x524   :  { %1482 = vmatmul.mubr.f32.vlgmr.msra.gmra.mrb[8].mxu0 %v889_v2 }
 0x5f7   :  { %v1058_v12 = vpop.f32.mrb[8].mxu0 }
 0x5f8   :  { %v1059_v13 = vadd.f32 %v1058_v12, %v988_v61  ;;  %v1483_v14 = vpop.f32.mrb[9].mxu0 }
 0x5fa   :  { %v1066_v15 = vadd.f32 %v1065_v11, %v1059_v13 }
 0x5fc   :  { %v1067_v16 = vmax.f32 %v1066_v15, 0.0 }
 0x5fe   :  { %1493 = vmatmul.mubr.msk.f32.vlgmr.msra.gmra.mrb[12].mxu1 %vm236_vm2, %v1067_v16 }
 0x6d1   :  { %v1145_v17 = vpop.f32.mrb[12].mxu1 }
 0x6d2   :  { %v1146_v18 = vadd.f32 %v1145_v17, %v1075_v4  ;;  %v1494_v19 = vpop.f32.mrb[13].mxu1 }
 0x6d4   :  { %1150 = vst.msk [vmem:[#allocation2] sm:$0xf] %vm1149_vm4, %v1146_v18 }
 0x6d5   :  { %1752 = shalt.err (!%p1749_p4)
}
 0x6d6   :  { %s1753_s19 = scalar_lea.hbm %s2522_s4, 64 }
 0x6d7   :  { %p1754_p5 = scmp.ne.s32.totalorder %s2522_s4, %s1753_s19  ;;  %p1757_p6 = scmp.lt.u32.totalorder %s1753_s19, %s2522_s4 }
 0x6d9   :  { %p1759_p7 = pnand %p1757_p6, %p1754_p5 }
 0x6db   :  { %1762 = shalt.err (!%p1759_p7)
}
 0x6dc   :  { %1160 = dma.vmem_to_hbm [thread:$0]  %s1158_s17, 64, %s2522_s4, [#allocation3]  }
 0x6dd   :  { %1763 = dma.done.wait [#allocation3], 64  }
 0x6de   :  { %1764 = vsyncadd [#allocation3], 4294967232 }
 0x6df   :  { %1164 = vsyncpa [#allocation3], 1 }

</bundles_post_ra>
